<compile_context>
chip_gen: v5e
topology: v5e:2x2
jax: 0.10.0
libtpu: 0.0.40
codegen_flags: <defaults>
</compile_context>

<pallas_src>
import jax
import jax.numpy as jnp
from jax.experimental import pallas as pl
from jax.experimental.pallas import tpu as pltpu

EMBED_DIM = 32                     # embed_dim used in the example
SEQ = 24                           # fixed by `embed_dim * 24` in the Linear
IN_FEATURES = EMBED_DIM * SEQ      # 768 (multiple of 128 -> clean lane tiling)
ROWS = 16                          # fixed by `out.view(16, -1)` in the module

_LANE = 128
# 512 rows x 768 feats x 4 B ~= 1.5 MiB per pipeline buffer -> ~85% of HBM roofline
# per measured tiled-elementwise data, comfortably under v7x's 32 MiB scoped-VMEM default.
_ROW_BLOCK_MAX = 512


def _round_up(x, m):
    return ((x + m - 1) // m) * m


def _mlp_kernel(x_ref, w_ref, b_ref, o_ref):
    # x: (rb, 768) native dtype; w: (1, 768) native dtype; b: (1,) f32 in SMEM.
    x = x_ref[...].astype(jnp.float32)                 # upcast AFTER the (possibly bf16) DMA
    w = w_ref[...].astype(jnp.float32)                 # (1, 768) broadcasts over rows
    s = jnp.sum(x * w, axis=-1)                        # VPU mul + XLU lane reduce -> (rb,)
    o_ref[...] = jax.nn.sigmoid(s + b_ref[0])[None, :]  # lane-dense (1, rb) store


def gbi_cap_mlp(out, weight, bias):
    """Pallas implementation of GBi_Cap_model.MLP (optionally batched).

    out:    any array whose elements reshape to (R, IN_FEATURES), R a multiple of 16
            for the module's view(16, -1) semantics (e.g. (16, 24, embed_dim) or
            (B, 16, 24, embed_dim)).  Kept in its native dtype (bf16 halves DMA traffic).
    weight: (1, IN_FEATURES)  -- torch nn.Linear weight layout (no transpose needed)
    bias:   (1,)
    returns: (R,) f32, sigmoid(linear(rows)).
    """
    x = out.reshape(-1, IN_FEATURES)                   # native dtype, no wrapper-side cast
    rows = x.shape[0]

    row_block = min(_ROW_BLOCK_MAX, _round_up(rows, _LANE))
    rows_pad = _round_up(rows, row_block)
    if rows_pad != rows:
        x = jnp.pad(x, ((0, rows_pad - rows), (0, 0)))
    num_blocks = rows_pad // row_block

    w = weight.reshape(1, IN_FEATURES)                 # native lane-dense layout, cast in-kernel
    b = bias.reshape(1)
    if b.dtype != jnp.float32:                         # SMEM scalar path wants a 32-bit scalar
        b = b.astype(jnp.float32)

    y = pl.pallas_call(
        _mlp_kernel,
        out_shape=jax.ShapeDtypeStruct((1, rows_pad), jnp.float32),
        grid=(num_blocks,),
        in_specs=[
            pl.BlockSpec((row_block, IN_FEATURES), lambda g: (g, 0)),   # row tile
            pl.BlockSpec((1, IN_FEATURES), lambda g: (0, 0)),           # weight (resident)
            pl.BlockSpec(memory_space=pltpu.MemorySpace.SMEM),          # bias scalar
        ],
        out_specs=pl.BlockSpec((1, row_block), lambda g: (0, g)),       # lane-dense packing
        compiler_params=pltpu.CompilerParams(
            dimension_semantics=("parallel",),          # v7x: shard row blocks over both TCs
        ),
    )(x, w, b)

    return y[0, :rows]


def gbi_cap_forward(bilstm_out, weight, bias):
    # forward(x): CNN -> CpasNet -> Bilstm -> MLP.
    # TODO(synk): the three upstream submodules are opaque constructor args;
    #             this forward starts from the Bilstm output (single (16, 24, embed_dim) slab).
    # NOTE: if the producer is itself a Pallas kernel, prefer fusing this multiply +
    #       lane-reduce + sigmoid as an epilogue on its resident VMEM tile instead of
    #       a standalone call; this wrapper covers the standalone / batched case.
    return gbi_cap_mlp(bilstm_out, weight, bias)


def _reference(out, weight, bias):
    x = out.reshape(-1, IN_FEATURES).astype(jnp.float32)
    return jax.nn.sigmoid(x @ weight.reshape(1, IN_FEATURES).T.astype(jnp.float32)
                          + bias.astype(jnp.float32))[:, 0]


if __name__ == "__main__":
    key = jax.random.PRNGKey(0)
    k_out, k_w, k_b, k_batch = jax.random.split(key, 4)

    # Deterministic nn.Linear(embed_dim*24, 1) parameters (uniform, torch-like scale)
    bound = 1.0 / (IN_FEATURES ** 0.5)
    weight = jax.random.uniform(k_w, (1, IN_FEATURES), minval=-bound, maxval=bound,
                                dtype=jnp.float32)
    bias = jax.random.uniform(k_b, (1,), minval=-bound, maxval=bound, dtype=jnp.float32)

    # 1) Module semantics: single Bilstm output slab (16, seq=24, embed_dim=32), f32
    #    (the torch module explicitly converts to FloatTensor before the Linear).
    bilstm_out = jax.random.normal(k_out, (ROWS, SEQ, EMBED_DIM), dtype=jnp.float32)
    result = gbi_cap_forward(bilstm_out, weight, bias)
    result = jax.block_until_ready(result)
    assert result.shape == (ROWS,)
    assert jnp.allclose(result, _reference(bilstm_out, weight, bias), atol=1e-5, rtol=1e-5)

    # 2) Batched path: 8 slabs kept in bf16 end-to-end (halves the mem-bound DMA),
    #    128 rows -> one lane-dense 128-wide output block.
    batch = jax.random.normal(k_batch, (8, ROWS, SEQ, EMBED_DIM), dtype=jnp.float32)
    batch = batch.astype(jnp.bfloat16)
    result_b = gbi_cap_mlp(batch, weight, bias)
    result_b = jax.block_until_ready(result_b)
    assert result_b.shape == (8 * ROWS,)
    assert jnp.allclose(result_b, _reference(batch, weight, bias), atol=1e-4, rtol=1e-4)

    print("KERNEL_OK")
</pallas_src>

<mosaic_0001>
module attributes {stable_mosaic.version = 11 : i64} {
  func.func @_mlp_kernel(%arg0: i32, %arg1: memref<128x768xf32, #tpu.memory_space<vmem>>, %arg2: memref<1x768xf32, #tpu.memory_space<vmem>>, %arg3: memref<1xf32, #tpu.memory_space<smem>>, %arg4: memref<1x128xf32, #tpu.memory_space<vmem>>) attributes {dimension_semantics = [#tpu.dimension_semantics<parallel>], iteration_bounds = array<i64: 1>, scalar_prefetch = 0 : i64, scratch_operands = 0 : i64, tpu.core_type = #tpu.core_type<tc>, window_params = [{transform_indices = @transform_0, window_bounds = array<i64: 128, 768>}, {pipeline_mode = #tpu.pipeline_mode<synchronous>, transform_indices = @transform_1, window_bounds = array<i64: 1, 768>}, {transform_indices = @transform_2, window_bounds = array<i64: 1>}, {transform_indices = @transform_3, window_bounds = array<i64: 1, 128>}]} {
    %c0 = arith.constant 0 : index
    %c0_0 = arith.constant 0 : index
    %0 = vector.load %arg1[%c0, %c0_0] : memref<128x768xf32, #tpu.memory_space<vmem>>, vector<128x768xf32>
    %c0_1 = arith.constant 0 : index
    %c0_2 = arith.constant 0 : index
    %1 = vector.load %arg2[%c0_1, %c0_2] : memref<1x768xf32, #tpu.memory_space<vmem>>, vector<1x768xf32>
    %2 = vector.broadcast %1 : vector<1x768xf32> to vector<128x768xf32>
    %3 = arith.mulf %0, %2 : vector<128x768xf32>
    %cst = arith.constant dense<0.000000e+00> : vector<128xf32>
    %4 = vector.multi_reduction <add>, %3, %cst [1] : vector<128x768xf32> to vector<128xf32>
    %c0_3 = arith.constant 0 : index
    %5 = memref.load %arg3[%c0_3] : memref<1xf32, #tpu.memory_space<smem>>
    %6 = vector.broadcast %5 : f32 to vector<128xf32>
    %7 = arith.addf %4, %6 : vector<128xf32>
    %8 = arith.negf %7 : vector<128xf32>
    %9 = math.exp %8 : vector<128xf32>
    %cst_4 = arith.constant 1.000000e+00 : f32
    %10 = vector.broadcast %cst_4 : f32 to vector<128xf32>
    %11 = arith.addf %10, %9 : vector<128xf32>
    %12 = arith.divf %10, %11 : vector<128xf32>
    %13 = vector.shape_cast %12 : vector<128xf32> to vector<1x128xf32>
    %c0_5 = arith.constant 0 : index
    %c0_6 = arith.constant 0 : index
    %14 = vector.load %arg4[%c0_5, %c0_6] : memref<1x128xf32, #tpu.memory_space<vmem>>, vector<1x128xf32>
    tpu.vector_store %arg4[%c0_5, %c0_6], %13 {strides = array<i32>} : memref<1x128xf32, #tpu.memory_space<vmem>>, vector<1x128xf32>,
    return
  }
  func.func @transform_0(%arg0: i32) -> (i32, i32) {
    %c0_i32 = arith.constant 0 : i32
    %c0_i32_0 = arith.constant 0 : i32
    return %arg0, %c0_i32 : i32, i32
  }
  func.func @transform_1(%arg0: i32) -> (i32, i32) {
    %c0_i32 = arith.constant 0 : i32
    %c0_i32_0 = arith.constant 0 : i32
    %c0_i32_1 = arith.constant 0 : i32
    return %c0_i32, %c0_i32_0 : i32, i32
  }
  func.func @transform_2(%arg0: i32) -> i32 {
    %c0_i32 = arith.constant 0 : i32
    %c0_i32_0 = arith.constant 0 : i32
    return %c0_i32 : i32
  }
  func.func @transform_3(%arg0: i32) -> (i32, i32) {
    %c0_i32 = arith.constant 0 : i32
    %c0_i32_0 = arith.constant 0 : i32
    return %c0_i32, %arg0 : i32, i32
  }
}

</mosaic_0001>

<bundles_post_ra>
// kernel: tpu_custom_call.1
= control target key start
LH: loop header
LB: loop body
LE: loop exit
PB: predicated region body
PF: predicated region fallthrough
CT: control target
= control target key end

     0   :  { %9 = vsyncpa [#allocation4], 0  ;;  %s1568_s0 = inlined_call_operand.hbm [shape: f32[128,768], index: 0, kind: input, shape index: {}]   ;;  %s1569_s1 = inlined_call_operand.hbm [shape: f32[1,768], index: 1, kind: input, shape index: {}]   ;;  %s1570_s2 = inlined_call_operand.<no memory space> [shape: f32[1], index: 2, kind: input, shape index: {}]   ;;  %s1571_s3 = inlined_call_operand.hbm [shape: f32[1,128], index: 3, kind: output, shape index: {}]  }
   0x1   :  { %10 = vsyncpa [#allocation7], 0 }
   0x2   :  { %11 = vsyncpa [#allocation5], 0  ;;  %s16_s14 = sshll.u32 %s1568_s0, 4  ;;  %s948_s15 = smov [#allocation3]   ;;  %s17_s14 = int_to_ptr.hbm [resolvable:$true] %s16_s14 }
   0x3   :  { %s18_s16 = sshll.u32 %s948_s15, 4  ;;  %s30_s19 = sshll.u32 %s1569_s1, 4  ;;  %s19_s16 = int_to_ptr.vmem [resolvable:$true] %s18_s16  ;;  %s31_s19 = int_to_ptr.hbm [resolvable:$true] %s30_s19 }
   0x4   :  { %s949_s20 = smov 768   ;;  %s950_s21 = smov 48  }
   0x5   :  { %24 = dma.hbm_to_vmem [thread:$0]  %s17_s14, 12288, %s19_s16, [#allocation4], %s949_s20, %s949_s20, %s950_s21  }
   0x6   :  { %s951_s22 = smov [#allocation6]  }
   0x7   :  { %s32_s23 = sshll.u32 %s951_s22, 4  ;;  %s33_s23 = int_to_ptr.vmem [resolvable:$true] %s32_s23 }
   0x8   :  { %35 = dma.hbm_to_vmem [thread:$0]  %s31_s19, 96, %s33_s23, [#allocation7]  }
   0x9   :  { %942 = dma.done.wait [#allocation4], 12288  }
   0xa   :  { %943 = vsyncadd [#allocation4], 4294955008 }
   0xb   :  { %944 = dma.done.wait [#allocation7], 96  }
   0xc   :  { %945 = vsyncadd [#allocation7], 4294967200  ;;  %v70_v0 = vld [vmem:[#allocation3 + $0xc0] sm:$0xff]  ;;  %v71_v1 = vld [vmem:[#allocation3 + $0xc8] sm:$0xff]  ;;  %s774_s27 = sshll.u32 %s1571_s3, 4  ;;  %s775_s27 = int_to_ptr.hbm [resolvable:$true] %s774_s27 }
   0xd   :  { %v72_v2 = vld [vmem:[#allocation3 + $0xd0] sm:$0xff]  ;;  %v73_v3 = vld [vmem:[#allocation3 + $0xd8] sm:$0xff]  ;;  %v142_v4 = vld [vmem:[#allocation6] sm:$0x3f] }
   0xe   :  { %v979_v5 = vperm.slane %v142_v4, 0  ;;  %v981_v6 = vperm.slane %v142_v4, 1  ;;  %v983_v7 = vperm.slane %v142_v4, 2  ;;  %v985_v8 = vperm.slane %v142_v4, 3  ;;  %v58_v9 = vld [vmem:[#allocation3 + $0x60] sm:$0xff]  ;;  %v59_v10 = vld [vmem:[#allocation3 + $0x68] sm:$0xff] }
   0xf   :  { %v74_v11 = vld [vmem:[#allocation3 + $0xe0] sm:$0xff]  ;;  %v75_v12 = vld [vmem:[#allocation3 + $0xe8] sm:$0xff]  ;;  %v987_v13 = vperm.slane %v142_v4, 4  ;;  %v989_v14 = vperm.slane %v142_v4, 5  ;;  %v60_v15 = vld [vmem:[#allocation3 + $0x70] sm:$0xff] }
  0x10   :  { %v180_v16 = vmul.f32 %v979_v5, %v70_v0  ;;  %v181_v17 = vmul.f32 %v981_v6, %v71_v1  ;;  %v182_v18 = vmul.f32 %v983_v7, %v72_v2  ;;  %v61_v19 = vld [vmem:[#allocation3 + $0x78] sm:$0xff]  ;;  %v46_v20 = vld [vmem:[#allocation3] sm:$0xff]  ;;  %v47_v21 = vld [vmem:[#allocation3 + $0x8] sm:$0xff]  ;;  %v183_v22 = vmul.f32 %v985_v8, %v73_v3 }
  0x11   :  { %v62_v23 = vld [vmem:[#allocation3 + $0x80] sm:$0xff]  ;;  %v63_v24 = vld [vmem:[#allocation3 + $0x88] sm:$0xff]  ;;  %v168_v25 = vmul.f32 %v979_v5, %v58_v9  ;;  %v169_v26 = vmul.f32 %v981_v6, %v59_v10  ;;  %v48_v27 = vld [vmem:[#allocation3 + $0x10] sm:$0xff]  ;;  %v184_v28 = vmul.f32 %v987_v13, %v74_v11  ;;  %v185_v29 = vmul.f32 %v989_v14, %v75_v12 }
  0x12   :  { %v280_v30 = vadd.f32 %v181_v17, %v180_v16  ;;  %v170_v31 = vmul.f32 %v983_v7, %v60_v15  ;;  %v49_v32 = vld [vmem:[#allocation3 + $0x18] sm:$0xff]  ;;  %v76_v33 = vld [vmem:[#allocation3 + $0xf0] sm:$0xff]  ;;  %v171_v34 = vmul.f32 %v985_v8, %v61_v19  ;;  %v50_v36 = vld [vmem:[#allocation3 + $0x20] sm:$0xff]  ;;  %v156_v37 = vmul.f32 %v979_v5, %v46_v20 }
  0x13   :  { %v266_v35 = vadd.f32 %v169_v26, %v168_v25  ;;  %v157_v38 = vmul.f32 %v981_v6, %v47_v21  ;;  %v77_v39 = vld [vmem:[#allocation3 + $0xf8] sm:$0xff]  ;;  %v78_v40 = vld [vmem:[#allocation3 + $0x100] sm:$0xff]  ;;  %v172_v42 = vmul.f32 %v987_v13, %v62_v23  ;;  %v173_v43 = vmul.f32 %v989_v14, %v63_v24  ;;  %v51_v44 = vld [vmem:[#allocation3 + $0x28] sm:$0xff] }
  0x14   :  { %v281_v41 = vadd.f32 %v280_v30, %v182_v18  ;;  %v158_v45 = vmul.f32 %v983_v7, %v48_v27  ;;  %v79_v46 = vld [vmem:[#allocation3 + $0x108] sm:$0xff]  ;;  %v159_v48 = vmul.f32 %v985_v8, %v49_v32  ;;  %v186_v50 = vmul.f32 %v979_v5, %v76_v33  ;;  %v64_v51 = vld [vmem:[#allocation3 + $0x90] sm:$0xff]  ;;  %v65_v52 = vld [vmem:[#allocation3 + $0x98] sm:$0xff] }
  0x15   :  { %v267_v47 = vadd.f32 %v266_v35, %v170_v31  ;;  %v252_v49 = vadd.f32 %v157_v38, %v156_v37  ;;  %v160_v54 = vmul.f32 %v987_v13, %v50_v36  ;;  %v80_v55 = vld [vmem:[#allocation3 + $0x110] sm:$0xff]  ;;  %v187_v56 = vmul.f32 %v981_v6, %v77_v39  ;;  %v66_v58 = vld [vmem:[#allocation3 + $0xa0] sm:$0xff]  ;;  %v81_v62 = vld [vmem:[#allocation3 + $0x118] sm:$0xff] }
  0x16   :  { %v282_v53 = vadd.f32 %v281_v41, %v183_v22  ;;  %v188_v57 = vmul.f32 %v983_v7, %v78_v40  ;;  %v161_v60 = vmul.f32 %v989_v14, %v51_v44  ;;  %v189_v63 = vmul.f32 %v985_v8, %v79_v46  ;;  %v67_v0 = vld [vmem:[#allocation3 + $0xa8] sm:$0xff]  ;;  %v52_v9 = vld [vmem:[#allocation3 + $0x30] sm:$0xff]  ;;  %v53_v17 = vld [vmem:[#allocation3 + $0x38] sm:$0xff] }
  0x17   :  { %v268_v59 = vadd.f32 %v267_v47, %v171_v34  ;;  %v253_v61 = vadd.f32 %v252_v49, %v158_v45  ;;  %v287_v2 = vadd.f32 %v187_v56, %v186_v50  ;;  %v174_v3 = vmul.f32 %v979_v5, %v64_v51  ;;  %v68_v15 = vld [vmem:[#allocation3 + $0xb0] sm:$0xff]  ;;  %v54_v18 = vld [vmem:[#allocation3 + $0x40] sm:$0xff]  ;;  %v69_v22 = vld [vmem:[#allocation3 + $0xb8] sm:$0xff] }
  0x18   :  { %v283_v1 = vadd.f32 %v282_v53, %v184_v28  ;;  %v175_v4 = vmul.f32 %v981_v6, %v65_v52  ;;  %v190_v12 = vmul.f32 %v987_v13, %v80_v55  ;;  %v176_v16 = vmul.f32 %v983_v7, %v66_v58  ;;  %v55_v24 = vld [vmem:[#allocation3 + $0x48] sm:$0xff]  ;;  %v94_v30 = vld [vmem:[#allocation3 + $0x180] sm:$0xff]  ;;  %v56_v34 = vld [vmem:[#allocation3 + $0x50] sm:$0xff] }
  0x19   :  { %v269_v10 = vadd.f32 %v268_v59, %v172_v42  ;;  %v254_v11 = vadd.f32 %v253_v61, %v159_v48  ;;  %v191_v20 = vmul.f32 %v989_v14, %v81_v62  ;;  %v288_v21 = vadd.f32 %v287_v2, %v188_v57  ;;  %v95_v31 = vld [vmem:[#allocation3 + $0x188] sm:$0xff]  ;;  %v96_v37 = vld [vmem:[#allocation3 + $0x190] sm:$0xff]  ;;  %v97_v42 = vld [vmem:[#allocation3 + $0x198] sm:$0xff] }
  0x1a   :  { %v284_v19 = vadd.f32 %v283_v1, %v185_v29  ;;  %v177_v23 = vmul.f32 %v985_v8, %v67_v0  ;;  %v273_v27 = vadd.f32 %v175_v4, %v174_v3  ;;  %v162_v28 = vmul.f32 %v979_v5, %v52_v9  ;;  %v57_v29 = vld [vmem:[#allocation3 + $0x58] sm:$0xff]  ;;  %v88_v47 = vld [vmem:[#allocation3 + $0x150] sm:$0xff]  ;;  %v90_v49 = vld [vmem:[#allocation3 + $0x160] sm:$0xff] }
  0x1b   :  { %v270_v25 = vadd.f32 %v269_v10, %v173_v43  ;;  %v255_v26 = vadd.f32 %v254_v11, %v160_v54  ;;  %v289_v32 = vadd.f32 %v288_v21, %v189_v63  ;;  %v178_v33 = vmul.f32 %v987_v13, %v68_v15  ;;  %v89_v48 = vld [vmem:[#allocation3 + $0x158] sm:$0xff]  ;;  %v98_v53 = vld [vmem:[#allocation3 + $0x1a0] sm:$0xff]  ;;  %v99_v54 = vld [vmem:[#allocation3 + $0x1a8] sm:$0xff] }
  0x1c   :  { %285 = vadd.xlane.f32.xlu2 %v284_v19  ;;  %v163_v35 = vmul.f32 %v981_v6, %v53_v17  ;;  %v164_v36 = vmul.f32 %v983_v7, %v54_v18  ;;  %v179_v39 = vmul.f32 %v989_v14, %v69_v22  ;;  %v274_v40 = vadd.f32 %v273_v27, %v176_v16  ;;  %v82_v61 = vld [vmem:[#allocation3 + $0x120] sm:$0xff]  ;;  %v83_v2 = vld [vmem:[#allocation3 + $0x128] sm:$0xff]  ;;  %v84_v3 = vld [vmem:[#allocation3 + $0x130] sm:$0xff] }
  0x1d   :  { %271 = vadd.xlane.f32.xlu1 %v270_v25  ;;  %v256_v38 = vadd.f32 %v255_v26, %v161_v60  ;;  %v165_v41 = vmul.f32 %v985_v8, %v55_v24  ;;  %v290_v43 = vadd.f32 %v289_v32, %v190_v12  ;;  %v204_v45 = vmul.f32 %v979_v5, %v94_v30  ;;  %v91_v60 = vld [vmem:[#allocation3 + $0x168] sm:$0xff]  ;;  %v92_v12 = vld [vmem:[#allocation3 + $0x170] sm:$0xff]  ;;  %v93_v15 = vld [vmem:[#allocation3 + $0x178] sm:$0xff] }
  0x1e   :  { %v259_v44 = vadd.f32 %v163_v35, %v162_v28  ;;  %v205_v46 = vmul.f32 %v981_v6, %v95_v31  ;;  %v275_v50 = vadd.f32 %v274_v40, %v177_v23  ;;  %v166_v51 = vmul.f32 %v987_v13, %v56_v34  ;;  %v85_v16 = vld [vmem:[#allocation3 + $0x138] sm:$0xff]  ;;  %v112_v21 = vld [vmem:[#allocation3 + $0x210] sm:$0xff]  ;;  %v86_v24 = vld [vmem:[#allocation3 + $0x140] sm:$0xff] }
  0x1f   :  { %257 = vadd.xlane.f32.xlu0 %v256_v38  ;;  %v167_v52 = vmul.f32 %v989_v14, %v57_v29  ;;  %v206_v55 = vmul.f32 %v983_v7, %v96_v37  ;;  %v291_v56 = vadd.f32 %v290_v43, %v191_v20  ;;  %v207_v58 = vmul.f32 %v985_v8, %v97_v42  ;;  %v113_v27 = vld [vmem:[#allocation3 + $0x218] sm:$0xff]  ;;  %v114_v28 = vld [vmem:[#allocation3 + $0x220] sm:$0xff]  ;;  %v115_v29 = vld [vmem:[#allocation3 + $0x228] sm:$0xff] }
  0x20   :  { %v260_v57 = vadd.f32 %v259_v44, %v164_v36  ;;  %v308_v59 = vadd.f32 %v205_v46, %v204_v45  ;;  %v276_v62 = vadd.f32 %v275_v50, %v178_v33  ;;  %v198_v63 = vmul.f32 %v979_v5, %v88_v47  ;;  %v87_v33 = vld [vmem:[#allocation3 + $0x148] sm:$0xff]  ;;  %v116_v43 = vld [vmem:[#allocation3 + $0x230] sm:$0xff]  ;;  %v117_v44 = vld [vmem:[#allocation3 + $0x238] sm:$0xff] }
  0x21   :  { %v199_v0 = vmul.f32 %v981_v6, %v89_v48  ;;  %v200_v1 = vmul.f32 %v983_v7, %v90_v49  ;;  %v208_v9 = vmul.f32 %v987_v13, %v98_v53  ;;  %v209_v10 = vmul.f32 %v989_v14, %v99_v54  ;;  %v107_v40 = vld [vmem:[#allocation3 + $0x1e8] sm:$0xff]  ;;  %v108_v47 = vld [vmem:[#allocation3 + $0x1f0] sm:$0xff] }
  0x22   :  { %v261_v4 = vadd.f32 %v260_v57, %v165_v41  ;;  %v309_v11 = vadd.f32 %v308_v59, %v206_v55  ;;  %v277_v17 = vadd.f32 %v276_v62, %v179_v39  ;;  %v201_v18 = vmul.f32 %v985_v8, %v91_v60  ;;  %v106_v39 = vld [vmem:[#allocation3 + $0x1e0] sm:$0xff]  ;;  %v100_v57 = vld [vmem:[#allocation3 + $0x1b0] sm:$0xff] }
  0x23   :  { %v301_v19 = vadd.f32 %v199_v0, %v198_v63  ;;  %v192_v20 = vmul.f32 %v979_v5, %v82_v61  ;;  %v193_v25 = vmul.f32 %v981_v6, %v83_v2  ;;  %v194_v26 = vmul.f32 %v983_v7, %v84_v3  ;;  %v102_v59 = vld [vmem:[#allocation3 + $0x1c0] sm:$0xff]  ;;  %v111_v0 = vld [vmem:[#allocation3 + $0x208] sm:$0xff] }
  0x24   :  { %292 = vadd.xlane.f32.xlu2 %v291_v56  ;;  %v262_v22 = vadd.f32 %v261_v4, %v166_v51  ;;  %v310_v23 = vadd.f32 %v309_v11, %v207_v58  ;;  %v202_v30 = vmul.f32 %v987_v13, %v92_v12  ;;  %v203_v31 = vmul.f32 %v989_v14, %v93_v15  ;;  %v101_v58 = vld [vmem:[#allocation3 + $0x1b8] sm:$0xff]  ;;  %v110_v63 = vld [vmem:[#allocation3 + $0x200] sm:$0xff] }
  0x25   :  { %278 = vadd.xlane.f32.xlu1 %v277_v17  ;;  %v302_v32 = vadd.f32 %v301_v19, %v200_v1  ;;  %v195_v34 = vmul.f32 %v985_v8, %v85_v16  ;;  %v294_v37 = vadd.f32 %v193_v25, %v192_v20  ;;  %v222_v38 = vmul.f32 %v979_v5, %v112_v21  ;;  %v130_v11 = vld [vmem:[#allocation3 + $0x2a0] sm:$0xff]  ;;  %v132_v19 = vld [vmem:[#allocation3 + $0x2b0] sm:$0xff]  ;;  %v133_v25 = vld [vmem:[#allocation3 + $0x2b8] sm:$0xff] }
  0x26   :  { %v263_v35 = vadd.f32 %v262_v22, %v167_v52  ;;  %v311_v36 = vadd.f32 %v310_v23, %v208_v9  ;;  %v196_v42 = vmul.f32 %v987_v13, %v86_v24  ;;  %v223_v45 = vmul.f32 %v981_v6, %v113_v27  ;;  %v109_v52 = vld [vmem:[#allocation3 + $0x1f8] sm:$0xff]  ;;  %v104_v24 = vld [vmem:[#allocation3 + $0x1d0] sm:$0xff] }
  0x27   :  { %v303_v41 = vadd.f32 %v302_v32, %v201_v18  ;;  %v224_v46 = vmul.f32 %v983_v7, %v114_v28  ;;  %v197_v49 = vmul.f32 %v989_v14, %v87_v33  ;;  %v295_v50 = vadd.f32 %v294_v37, %v194_v26  ;;  %v131_v18 = vld [vmem:[#allocation3 + $0x2a8] sm:$0xff]  ;;  %v126_v37 = vld [vmem:[#allocation3 + $0x280] sm:$0xff] }
  0x28   :  { %264 = vadd.xlane.f32.xlu0 %v263_v35  ;;  %v312_v48 = vadd.f32 %v311_v36, %v209_v10  ;;  %v225_v51 = vmul.f32 %v985_v8, %v115_v29  ;;  %v329_v54 = vadd.f32 %v223_v45, %v222_v38  ;;  %v216_v55 = vmul.f32 %v979_v5, %v106_v39  ;;  %v103_v10 = vld [vmem:[#allocation3 + $0x1c8] sm:$0xff]  ;;  %v125_v36 = vld [vmem:[#allocation3 + $0x278] sm:$0xff] }
  0x29   :  { %v304_v53 = vadd.f32 %v303_v41, %v202_v30  ;;  %v217_v56 = vmul.f32 %v981_v6, %v107_v40  ;;  %v296_v60 = vadd.f32 %v295_v50, %v195_v34  ;;  %v226_v61 = vmul.f32 %v987_v13, %v116_v43  ;;  %v105_v34 = vld [vmem:[#allocation3 + $0x1d8] sm:$0xff]  ;;  %v134_v40 = vld [vmem:[#allocation3 + $0x2c0] sm:$0xff] }
  0x2a   :  { %v227_v62 = vmul.f32 %v989_v14, %v117_v44  ;;  %v218_v1 = vmul.f32 %v983_v7, %v108_v47  ;;  %v330_v3 = vadd.f32 %v329_v54, %v224_v46  ;;  %v219_v4 = vmul.f32 %v985_v8, %v109_v52  ;;  %v118_v47 = vld [vmem:[#allocation3 + $0x240] sm:$0xff]  ;;  %v128_v52 = vld [vmem:[#allocation3 + $0x290] sm:$0xff] }
  0x2b   :  { %v305_v2 = vadd.f32 %v304_v53, %v203_v31  ;;  %v322_v9 = vadd.f32 %v217_v56, %v216_v55  ;;  %v297_v12 = vadd.f32 %v296_v60, %v196_v42  ;;  %v210_v15 = vmul.f32 %v979_v5, %v100_v57  ;;  %v124_v31 = vld [vmem:[#allocation3 + $0x270] sm:$0xff]  ;;  %v127_v42 = vld [vmem:[#allocation3 + $0x288] sm:$0xff]  ;;  %v121_v60 = vld [vmem:[#allocation3 + $0x258] sm:$0xff] }
  0x2c   :  { %313 = vadd.xlane.f32.xlu2 %v312_v48  ;;  %v211_v16 = vmul.f32 %v981_v6, %v101_v58  ;;  %v212_v17 = vmul.f32 %v983_v7, %v102_v59  ;;  %v331_v20 = vadd.f32 %v330_v3, %v225_v51  ;;  %v220_v21 = vmul.f32 %v987_v13, %v110_v63  ;;  %v119_v48 = vld [vmem:[#allocation3 + $0x248] sm:$0xff]  ;;  %v120_v55 = vld [vmem:[#allocation3 + $0x250] sm:$0xff]  ;;  %v138_v3 = vld [vmem:[#allocation3 + $0x2e0] sm:$0xff] }
  0x2d   :  { %306 = vadd.xlane.f32.xlu1 %v305_v2  ;;  %v221_v22 = vmul.f32 %v989_v14, %v111_v0  ;;  %v323_v23 = vadd.f32 %v322_v9, %v218_v1  ;;  %v298_v26 = vadd.f32 %v297_v12, %v197_v49  ;;  %v213_v27 = vmul.f32 %v985_v8, %v103_v10  ;;  %v135_v51 = vld [vmem:[#allocation3 + $0x2c8] sm:$0xff]  ;;  %v136_v1 = vld [vmem:[#allocation3 + $0x2d0] sm:$0xff]  ;;  %v137_v2 = vld [vmem:[#allocation3 + $0x2d8] sm:$0xff] }
  0x2e   :  { %v315_v28 = vadd.f32 %v211_v16, %v210_v15  ;;  %v240_v30 = vmul.f32 %v979_v5, %v130_v11  ;;  %v332_v32 = vadd.f32 %v331_v20, %v226_v61  ;;  %v241_v29 = vmul.f32 %v981_v6, %v131_v18  ;;  %v129_v10 = vld [vmem:[#allocation3 + $0x298] sm:$0xff]  ;;  %v122_v12 = vld [vmem:[#allocation3 + $0x260] sm:$0xff]  ;;  %v139_v20 = vld [vmem:[#allocation3 + $0x2e8] sm:$0xff] }
  0x2f   :  { %v324_v33 = vadd.f32 %v323_v23, %v219_v4  ;;  %v242_v35 = vmul.f32 %v983_v7, %v132_v19  ;;  %v214_v38 = vmul.f32 %v987_v13, %v104_v24  ;;  %v243_v41 = vmul.f32 %v985_v8, %v133_v25 }
  0x30   :  { %299 = vadd.xlane.f32.xlu0 %v298_v26  ;;  %v316_v39 = vadd.f32 %v315_v28, %v212_v17  ;;  %v333_v43 = vadd.f32 %v332_v32, %v227_v62  ;;  %v350_v45 = vadd.f32 %v241_v29, %v240_v30  ;;  %v234_v46 = vmul.f32 %v979_v5, %v124_v31  ;;  %v140_v32 = vld [vmem:[#allocation3 + $0x2f0] sm:$0xff] }
  0x31   :  { %v325_v44 = vadd.f32 %v324_v33, %v220_v21  ;;  %v215_v49 = vmul.f32 %v989_v14, %v105_v34  ;;  %v235_v53 = vmul.f32 %v981_v6, %v125_v36  ;;  %v236_v54 = vmul.f32 %v983_v7, %v126_v37 }
  0x32   :  { %v317_v50 = vadd.f32 %v316_v39, %v213_v27  ;;  %v244_v57 = vmul.f32 %v987_v13, %v134_v40  ;;  %v351_v58 = vadd.f32 %v350_v45, %v242_v35  ;;  %v237_v59 = vmul.f32 %v985_v8, %v127_v42 }
  0x33   :  { %v326_v56 = vadd.f32 %v325_v44, %v221_v22  ;;  %v343_v62 = vadd.f32 %v235_v53, %v234_v46  ;;  %v228_v63 = vmul.f32 %v979_v5, %v118_v47  ;;  %v229_v0 = vmul.f32 %v981_v6, %v119_v48  ;;  %v123_v22 = vld [vmem:[#allocation3 + $0x268] sm:$0xff] }
  0x34   :  { %334 = vadd.xlane.f32.xlu2 %v333_v43  ;;  %v318_v61 = vadd.f32 %v317_v50, %v214_v38  ;;  %v245_v4 = vmul.f32 %v989_v14, %v135_v51  ;;  %v352_v9 = vadd.f32 %v351_v58, %v243_v41  ;;  %v238_v11 = vmul.f32 %v987_v13, %v128_v52  ;;  %v141_v38 = vld [vmem:[#allocation3 + $0x2f8] sm:$0xff] }
  0x35   :  { %327 = vadd.xlane.f32.xlu1 %v326_v56  ;;  %v230_v15 = vmul.f32 %v983_v7, %v120_v55  ;;  %v344_v17 = vadd.f32 %v343_v62, %v236_v54  ;;  %v231_v18 = vmul.f32 %v985_v8, %v121_v60  ;;  %v336_v19 = vadd.f32 %v229_v0, %v228_v63 }
  0x36   :  { %v319_v16 = vadd.f32 %v318_v61, %v215_v49  ;;  %v353_v21 = vadd.f32 %v352_v9, %v244_v57  ;;  %v246_v23 = vmul.f32 %v979_v5, %v136_v1  ;;  %v247_v24 = vmul.f32 %v981_v6, %v137_v2 }
  0x37   :  { %v248_v25 = vmul.f32 %v983_v7, %v138_v3  ;;  %v239_v26 = vmul.f32 %v989_v14, %v129_v10  ;;  %v345_v27 = vadd.f32 %v344_v17, %v237_v59  ;;  %v232_v28 = vmul.f32 %v987_v13, %v122_v12 }
  0x38   :  { %320 = vadd.xlane.f32.xlu0 %v319_v16  ;;  %v337_v30 = vadd.f32 %v336_v19, %v230_v15  ;;  %v354_v31 = vadd.f32 %v353_v21, %v245_v4  ;;  %v249_v33 = vmul.f32 %v985_v8, %v139_v20  ;;  %v357_v34 = vadd.f32 %v247_v24, %v246_v23 }
  0x39   :  { %v346_v29 = vadd.f32 %v345_v27, %v238_v11  ;;  %v233_v35 = vmul.f32 %v989_v14, %v123_v22  ;;  %v250_v37 = vmul.f32 %v987_v13, %v140_v32  ;;  %v251_v41 = vmul.f32 %v989_v14, %v141_v38 }
  0x3a   :  { %v338_v5 = vadd.f32 %v337_v30, %v231_v18  ;;  %v358_v36 = vadd.f32 %v357_v34, %v248_v25  ;;  %v1090_v43 = vstv %s1570_s2  ;;  %v702_v10 = vlaneseq  ;;  %s952_s2 = smov [#allocation8]  }
  0x3b   :  { %v347_v6 = vadd.f32 %v346_v29, %v239_v26  ;;  %s772_s24 = sshll.u32 %s952_s2, 4  ;;  %s773_s24 = int_to_ptr.vmem [resolvable:$true] %s772_s24 }
  0x3c   :  { %355 = vadd.xlane.f32.xlu2 %v354_v31  ;;  %v339_v7 = vadd.f32 %v338_v5, %v232_v28  ;;  %v359_v39 = vadd.f32 %v358_v36, %v249_v33  ;;  %v1119_v21 = vand.u32 127, %v702_v10 }
  0x3d   :  { %348 = vadd.xlane.f32.xlu1 %v347_v6 }
  0x3e   :  { %v340_v40 = vadd.f32 %v339_v7, %v233_v35  ;;  %v360_v42 = vadd.f32 %v359_v39, %v250_v37  ;;  %v1130_v31 = vadd.s32 4294967264, %v1119_v21  ;;  %v1137_v35 = vadd.s32 4294967280, %v1119_v21 }
  0x3f   :  { %v1147_v38 = vadd.s32 4294967256, %v1119_v21  ;;  %v1150_v39 = vadd.s32 4294967272, %v1119_v21 }
  0x40   :  { %341 = vadd.xlane.f32.xlu0 %v340_v40  ;;  %v361_v8 = vadd.f32 %v360_v42, %v251_v41  ;;  %v1155_v41 = vadd.s32 4294967288, %v1119_v21 }
  0x48   :  { %362 = vadd.xlane.f32.xlu0 %v361_v8 }
  0x8f   :  { %v286_v44 = vpop.xlane.xlu2 %285 }
  0x90   :  { %v370_v45 = vadd.f32 %v1090_v43, %v286_v44  ;;  %v272_v46 = vpop.xlane.xlu1 %271 }
  0x91   :  { %v368_v13 = vadd.f32 %v1090_v43, %v272_v46 }
  0x92   :  { %v789_v47 = vmul.f32 -1.442695, %v370_v45  ;;  %v258_v48 = vpop.xlane.xlu0 %257 }
  0x93   :  { %v787_v49 = vmul.f32 -1.442695, %v368_v13  ;;  %v366_v50 = vadd.f32 %v1090_v43, %v258_v48 }
  0x94   :  { %806 = vpow2.f32 %v789_v47 }
  0x95   :  { %808 = vpow2.f32 %v787_v49  ;;  %v785_v14 = vmul.f32 -1.442695, %v366_v50 }
  0x97   :  { %810 = vpow2.f32 %v785_v14  ;;  %v293_v51 = vpop.xlane.xlu2 %292 }
  0x98   :  { %v371_v52 = vadd.f32 %v1090_v43, %v293_v51  ;;  %v279_v53 = vpop.xlane.xlu1 %278 }
  0x99   :  { %v369_v54 = vadd.f32 %v1090_v43, %v279_v53 }
  0x9a   :  { %v807_v55 = vpop.eup %806  ;;  %v790_v56 = vmul.f32 -1.442695, %v371_v52 }
  0x9b   :  { %v809_v57 = vpop.eup %808  ;;  %v1097_v58 = vadd.f32 1.0, %v807_v55  ;;  %v788_v59 = vmul.f32 -1.442695, %v369_v54  ;;  %v265_v60 = vpop.xlane.xlu0 %264 }
  0x9c   :  { %v1099_v61 = vadd.f32 1.0, %v809_v57  ;;  %812 = vpow2.f32 %v790_v56  ;;  %v367_v62 = vadd.f32 %v1090_v43, %v265_v60 }
  0x9d   :  { %v811_v63 = vpop.eup %810  ;;  %814 = vrcp.f32 %v1097_v58  ;;  %v515_v32 = vand.u32 2147483647, %v1097_v58  ;;  %v517_v33 = vand.u32 2147483648, %v1097_v58  ;;  %vm511_vm0 = vweird.f32 %v1097_v58 }
  0x9e   :  { %816 = vrcp.f32 %v1099_v61  ;;  %v1104_v0 = vadd.f32 1.0, %v811_v63  ;;  %v786_v2 = vmul.f32 -1.442695, %v367_v62  ;;  %v485_v5 = vand.u32 2147483647, %v1099_v61 }
  0x9f   :  { %818 = vpow2.f32 %v788_v59  ;;  %v314_v1 = vpop.xlane.xlu2 %313  ;;  %v487_v37 = vand.u32 2147483648, %v1099_v61  ;;  %vm1159_vm1 = vcmp.eq.f32.partialorder %v515_v32, 8.507059e+37  ;;  %v518_v44 = vor.u32 1.1754944e-38, %v517_v33 }
  0xa0   :  { %v374_v3 = vadd.f32 %v1090_v43, %v314_v1  ;;  %v307_v4 = vpop.xlane.xlu1 %306  ;;  %820 = vrcp.f32 %v1104_v0  ;;  %vm481_vm2 = vweird.f32 %v1099_v61  ;;  %vm1167_vm3 = vcmp.eq.f32.partialorder %v485_v5, 8.507059e+37 }
  0xa1   :  { %822 = vpow2.f32 %v786_v2  ;;  %v373_v16 = vadd.f32 %v1090_v43, %v307_v4  ;;  %v455_v47 = vand.u32 2147483647, %v1104_v0  ;;  %v488_v50 = vor.u32 1.1754944e-38, %v487_v37 }
  0xa2   :  { %v813_v9 = vpop.eup %812  ;;  %v793_v11 = vmul.f32 -1.442695, %v374_v3  ;;  %v457_v14 = vand.u32 2147483648, %v1104_v0  ;;  %vm451_vm6 = vweird.f32 %v1104_v0 }
  0xa3   :  { %v1108_v12 = vpop.eup %814  ;;  %v1110_v15 = vadd.f32 1.0, %v813_v9  ;;  %v792_v24 = vmul.f32 -1.442695, %v373_v16  ;;  %v1134_v29 = vpop.xlane.xlu0 %299  ;;  %vm1193_vm9 = vcmp.eq.f32.partialorder %v455_v47, 8.507059e+37  ;;  %v1213_v9 = vadd.s32 4294967232, %v1119_v21 }
  0xa4   :  { %v1113_v17 = vpop.eup %816  ;;  %v507_v18 = vmul.f32 %v1108_v12, %v1097_v58  ;;  %824 = vpow2.f32 %v793_v11  ;;  %vm512_vm4 = vweird.f32 %v1108_v12  ;;  %v458_v3 = vor.u32 1.1754944e-38, %v457_v14 }
  0xa5   :  { %v819_v19 = vpop.eup %818  ;;  %v477_v20 = vmul.f32 %v1113_v17, %v1099_v61  ;;  %826 = vrcp.f32 %v1110_v15  ;;  %vm482_vm5 = vweird.f32 %v1113_v17  ;;  %v532_v53 = vand.u32 2147483648, %v1110_v15  ;;  %vm1189_vm8 = vmor %vm511_vm0, %vm512_vm4 }
  0xa6   :  { %v1122_v22 = vadd.f32 1.0, %v819_v19  ;;  %v1124_v23 = vpop.eup %820  ;;  %v508_v26 = vsub.f32 1.0, %v507_v18  ;;  %vm1207_vm10 = vmor %vm481_vm2, %vm482_vm5  ;;  %v530_v4 = vand.u32 2147483647, %v1110_v15  ;;  %v1229_v18 = vadd.s32 4294967240, %v1119_v21 }
  0xa7   :  { %v823_v25 = vpop.eup %822  ;;  %v447_v27 = vmul.f32 %v1124_v23, %v1104_v0  ;;  %v478_v28 = vsub.f32 1.0, %v477_v20  ;;  %v335_v54 = vpop.xlane.xlu2 %334  ;;  %vm452_vm7 = vweird.f32 %v1124_v23  ;;  %v1226_v16 = vor.u32 1.1754944e-38, %v532_v53 }
  0xa8   :  { %828 = vrcp.f32 %v1122_v22  ;;  %v1140_v36 = vadd.f32 1.0, %v823_v25  ;;  %v509_v7 = vmul.f32 %v1108_v12, %v508_v26  ;;  %v328_v57 = vpop.xlane.xlu1 %327  ;;  %v502_v63 = vand.u32 2147483648, %v1122_v22  ;;  %vm1222_vm11 = vmor %vm451_vm6, %vm452_vm7 }
  0xa9   :  { %v448_v34 = vsub.f32 1.0, %v447_v27  ;;  %830 = vpow2.f32 %v792_v24  ;;  %v479_v40 = vmul.f32 %v1113_v17, %v478_v28  ;;  %vm496_vm12 = vweird.f32 %v1122_v22 }
  0xaa   :  { %v825_v30 = vpop.eup %824  ;;  %832 = vrcp.f32 %v1140_v36  ;;  %v510_v49 = vadd.f32 %v1108_v12, %v509_v7  ;;  %v500_v0 = vand.u32 2147483647, %v1122_v22  ;;  %vm526_vm13 = vweird.f32 %v1110_v15 }
  0xab   :  { %v1142_v6 = vpop.eup %826  ;;  %v1157_v42 = vadd.f32 1.0, %v825_v30  ;;  %v449_v45 = vmul.f32 %v1124_v23, %v448_v34  ;;  %v480_v52 = vadd.f32 %v1113_v17, %v479_v40  ;;  %v321_v10 = vpop.xlane.xlu0 %320  ;;  %v470_v27 = vand.u32 2147483647, %v1140_v36 }
  0xac   :  { %v522_v48 = vmul.f32 %v1142_v6, %v1110_v15  ;;  %v514_v2 = vsel %vm1189_vm8, %v1108_v12, %v510_v49  ;;  %vm527_vm14 = vweird.f32 %v1142_v6  ;;  %v472_v32 = vand.u32 2147483648, %v1140_v36 }
  0xad   :  { %834 = vrcp.f32 %v1157_v42  ;;  %v450_v55 = vadd.f32 %v1124_v23, %v449_v45  ;;  %v484_v12 = vsel %vm1207_vm10, %v1113_v17, %v480_v52  ;;  %v1242_v25 = vsel %vm1159_vm1, %v518_v44, %v514_v2  ;;  %vm1315_vm10 = vmor %vm526_vm13, %vm527_vm14 }
  0xae   :  { %v1165_v46 = vpop.eup %828  ;;  %v523_v62 = vsub.f32 1.0, %v522_v48  ;;  %v1252_v28 = vsel %vm1167_vm3, %v488_v50, %v484_v12  ;;  %vm707_vm0 = vcmask 130112   ;;  %vm466_vm1 = vweird.f32 %v1140_v36 }
  0xaf   :  { %v831_v51 = vpop.eup %830  ;;  %v492_v56 = vmul.f32 %v1165_v46, %v1122_v22  ;;  %v454_v19 = vsel %vm1222_vm11, %v1124_v23, %v450_v55  ;;  %v1247_v23 = vor.u32 1.1754944e-38, %v502_v63  ;;  %vm497_vm15 = vweird.f32 %v1165_v46  ;;  %v356_v48 = vpop.xlane.xlu2 %355 }
  0xb0   :  { %v1198_v1 = vadd.f32 1.0, %v831_v51  ;;  %v833_v11 = vpop.eup %832  ;;  %v524_v26 = vmul.f32 %v1142_v6, %v523_v62  ;;  %v459_v34 = vsel %vm1193_vm9, %v458_v3, %v454_v19  ;;  %v372_v5 = vadd.f32 %v1090_v43, %v1134_v29  ;;  %v349_v52 = vpop.xlane.xlu1 %348  ;;  %vm1305_vm9 = vmor %vm496_vm12, %vm497_vm15 }
  0xb1   :  { %v493_v17 = vsub.f32 1.0, %v492_v56  ;;  %v462_v20 = vmul.f32 %v833_v11, %v1140_v36  ;;  %vm467_vm2 = vweird.f32 %v833_v11  ;;  %v377_v40 = vadd.f32 %v1090_v43, %v335_v54 }
  0xb2   :  { %836 = vrcp.f32 %v1198_v1  ;;  %v1268_v44 = vadd.f32 %v1142_v6, %v524_v26  ;;  %vm1270_vm3 = vcmp.eq.f32.partialorder %v470_v27, 8.507059e+37  ;;  %v791_v13 = vmul.f32 -1.442695, %v372_v5  ;;  %vm468_vm6 = vmor %vm466_vm1, %vm467_vm2 }
  0xb3   :  { %v1238_v24 = vpop.eup %834  ;;  %v463_v30 = vsub.f32 1.0, %v462_v20  ;;  %v494_v7 = vmul.f32 %v1165_v46, %v493_v17  ;;  %v376_v47 = vadd.f32 %v1090_v43, %v328_v57  ;;  %vm1275_vm4 = vcmp.eq.f32.partialorder %v500_v0, 8.507059e+37  ;;  %v342_v62 = vpop.xlane.xlu0 %341 }
  0xb4   :  { %v567_v33 = vmul.f32 %v1238_v24, %v1157_v42  ;;  %vm711_vm5 = vcmask 195712   ;;  %v473_v50 = vor.u32 1.1754944e-38, %v472_v32  ;;  %838 = vpow2.f32 %v791_v13 }
  0xb5   :  { %v464_v37 = vmul.f32 %v833_v11, %v463_v30  ;;  %v796_v53 = vmul.f32 -1.442695, %v377_v40  ;;  %v795_v54 = vmul.f32 -1.442695, %v376_v47  ;;  %v375_v55 = vadd.f32 %v1090_v43, %v321_v10 }
  0xb6   :  { %v568_v14 = vsub.f32 1.0, %v567_v33  ;;  %v495_v56 = vadd.f32 %v1165_v46, %v494_v7  ;;  %v380_v60 = vadd.f32 %v1090_v43, %v356_v48  ;;  %vm715_vm7 = vcmask 261312  }
  0xb7   :  { %v465_v49 = vadd.f32 %v833_v11, %v464_v37  ;;  %840 = vpow2.f32 %v796_v53  ;;  %v794_v2 = vmul.f32 -1.442695, %v375_v55  ;;  %v379_v36 = vadd.f32 %v1090_v43, %v349_v52 }
  0xb8   :  { %v1265_v8 = vpop.eup %836  ;;  %v718_v58 = vperm.slane %v1242_v25, %v1130_v31  ;;  %v710_v3 = vperm.slane %v1252_v28, %v1137_v35  ;;  %vm1296_vm8 = vcmp.eq.f32.partialorder %v530_v4, 8.507059e+37  ;;  %842 = vpow2.f32 %v795_v54 }
  0xb9   :  { %v552_v51 = vmul.f32 %v1265_v8, %v1198_v1  ;;  %v469_v57 = vsel %vm468_vm6, %v833_v11, %v465_v49  ;;  %v569_v61 = vmul.f32 %v1238_v24, %v568_v14  ;;  %844 = vpow2.f32 %v794_v2 }
  0xba   :  { %v474_v63 = vsel %vm1270_vm3, %v473_v50, %v469_v57  ;;  %v799_v35 = vmul.f32 -1.442695, %v380_v60  ;;  %v798_v19 = vmul.f32 -1.442695, %v379_v36  ;;  %v704_v4 = vperm.slane %v459_v34, %v1119_v21  ;;  %v839_v20 = vpop.eup %838 }
  0xbb   :  { %v553_v59 = vsub.f32 1.0, %v552_v51  ;;  %v706_v11 = vperm.slane %v474_v63, %v1155_v41  ;;  %v499_v22 = vsel %vm1305_vm9, %v1165_v46, %v495_v56  ;;  %vm719_vm11 = vcmask 326912   ;;  %v363_v29 = vpop.xlane.xlu0 %362 }
  0xbc   :  { %v378_v0 = vadd.f32 %v1090_v43, %v342_v62  ;;  %v529_v26 = vsel %vm1315_vm10, %v1142_v6, %v1268_v44  ;;  %vm571_vm12 = vweird.f32 %v1157_v42  ;;  %v575_v15 = vand.u32 2147483647, %v1157_v42 }
  0xbd   :  { %v554_v17 = vmul.f32 %v1265_v8, %v553_v59  ;;  %v577_v27 = vand.u32 2147483648, %v1157_v42  ;;  %v708_v28 = vsel %vm707_vm0, %v706_v11, %v704_v4  ;;  %vm572_vm13 = vweird.f32 %v1238_v24  ;;  %v841_v30 = vpop.eup %840 }
  0xbe   :  { %v1333_v46 = vadd.f32 1.0, %v839_v20  ;;  %846 = vpow2.f32 %v799_v35  ;;  %v504_v32 = vsel %vm1275_vm4, %v1247_v23, %v499_v22  ;;  %v570_v6 = vadd.f32 %v1238_v24, %v569_v61  ;;  %v843_v34 = vpop.eup %842  ;;  %vm1354_vm0 = vmor %vm571_vm12, %vm572_vm13 }
  0xbf   :  { %848 = vpow2.f32 %v798_v19  ;;  %v797_v33 = vmul.f32 -1.442695, %v378_v0  ;;  %v555_v5 = vadd.f32 %v1265_v8, %v554_v17  ;;  %vm556_vm14 = vweird.f32 %v1198_v1  ;;  %v845_v7 = vpop.eup %844 }
  0xc0   :  { %vm557_vm15 = vweird.f32 %v1265_v8  ;;  %850 = vrcp.f32 %v1333_v46  ;;  %v712_v37 = vsel %vm711_vm5, %v710_v3, %v708_v28  ;;  %v562_v40 = vand.u32 2147483648, %v1198_v1 }
  0xc1   :  { %v1345_v44 = vadd.f32 1.0, %v841_v30  ;;  %v1347_v23 = vadd.f32 1.0, %v843_v34  ;;  %v714_v45 = vperm.slane %v504_v32, %v1150_v39  ;;  %v560_v47 = vand.u32 2147483647, %v1198_v1  ;;  %vm1371_vm1 = vmor %vm556_vm14, %vm557_vm15 }
  0xc2   :  { %v1359_v48 = vadd.f32 1.0, %v845_v7  ;;  %852 = vpow2.f32 %v797_v33  ;;  %v534_v49 = vsel %vm1296_vm8, %v1226_v16, %v529_v26  ;;  %v574_v39 = vsel %vm1354_vm0, %v1238_v24, %v570_v6 }
  0xc3   :  { %vm723_vm2 = vcmask 392512   ;;  %854 = vrcp.f32 %v1345_v44  ;;  %v716_v14 = vsel %vm715_vm7, %v714_v45, %v712_v37  ;;  %v578_v51 = vor.u32 1.1754944e-38, %v577_v27 }
  0xc4   :  { %v847_v50 = vpop.eup %846  ;;  %v559_v16 = vsel %vm1371_vm1, %v1265_v8, %v555_v5  ;;  %856 = vrcp.f32 %v1347_v23  ;;  %vm576_vm3 = vcmp.eq.f32.partialorder %v575_v15, 8.507059e+37  ;;  %v563_v1 = vor.u32 1.1754944e-38, %v562_v40 }
  0xc5   :  { %v849_v24 = vpop.eup %848  ;;  %858 = vrcp.f32 %v1359_v48  ;;  %v381_v52 = vadd.f32 %v1090_v43, %v363_v29  ;;  %v722_v54 = vperm.slane %v534_v49, %v1147_v38  ;;  %v1384_v55 = vsel %vm576_vm3, %v578_v51, %v574_v39 }
  0xc6   :  { %v851_v53 = vpop.eup %850  ;;  %vm561_vm4 = vcmp.eq.f32.partialorder %v560_v47, 8.507059e+37  ;;  %v1387_v56 = vadd.s32 4294967248, %v1119_v21  ;;  %v720_v8 = vsel %vm719_vm11, %v718_v58, %v716_v14  ;;  %v1397_v43 = vadd.s32 4294967216, %v1119_v21 }
  0xc7   :  { %v1389_v57 = vsel %vm561_vm4, %v563_v1, %v559_v16  ;;  %v537_v59 = vmul.f32 %v851_v53, %v1333_v46  ;;  %v545_v38 = vand.u32 2147483647, %v1333_v46  ;;  %v1401_v62 = vadd.s32 4294967224, %v1119_v21 }
  0xc8   :  { %v853_v60 = vpop.eup %852  ;;  %v1403_v63 = vadd.f32 1.0, %v847_v50  ;;  %v1405_v2 = vadd.f32 1.0, %v849_v24  ;;  %v734_v31 = vperm.slane %v1384_v55, %v1213_v9  ;;  %v547_v58 = vand.u32 2147483648, %v1333_v46 }
  0xc9   :  { %v1407_v36 = vpop.eup %854  ;;  %v538_v25 = vsub.f32 1.0, %v537_v59  ;;  %v800_v3 = vmul.f32 -1.442695, %v381_v52  ;;  %v730_v11 = vperm.slane %v1389_v57, %v1229_v18  ;;  %v1417_v12 = vsel %vm723_vm2, %v722_v54, %v720_v8 }
  0xca   :  { %v1412_v10 = vpop.eup %856  ;;  %vm542_vm5 = vweird.f32 %v851_v53  ;;  %860 = vrcp.f32 %v1403_v63  ;;  %v612_v19 = vmul.f32 %v1407_v36, %v1345_v44  ;;  %v1424_v41 = vadd.f32 1.0, %v853_v60 }
  0xcb   :  { %v859_v61 = vpop.eup %858  ;;  %v539_v35 = vmul.f32 %v851_v53, %v538_v25  ;;  %v597_v4 = vmul.f32 %v1412_v10, %v1347_v23  ;;  %vm727_vm6 = vcmask 458112   ;;  %vm541_vm7 = vweird.f32 %v1333_v46 }
  0xcc   :  { %vm1427_vm8 = vcmp.eq.f32.partialorder %v545_v38, 8.507059e+37  ;;  %v582_v17 = vmul.f32 %v859_v61, %v1359_v48  ;;  %862 = vrcp.f32 %v1405_v2  ;;  %v548_v20 = vor.u32 1.1754944e-38, %v547_v58  ;;  %vm543_vm9 = vmor %vm541_vm7, %vm542_vm5 }
  0xcd   :  { %v540_v0 = vadd.f32 %v851_v53, %v539_v35  ;;  %v622_v26 = vand.u32 2147483648, %v1345_v44  ;;  %v598_v15 = vsub.f32 1.0, %v597_v4  ;;  %v605_v27 = vand.u32 2147483647, %v1347_v23 }
  0xce   :  { %v607_v28 = vand.u32 2147483648, %v1347_v23  ;;  %v583_v46 = vsub.f32 1.0, %v582_v17  ;;  %864 = vpow2.f32 %v800_v3  ;;  %v613_v32 = vsub.f32 1.0, %v612_v19 }
  0xcf   :  { %v544_v30 = vsel %vm543_vm9, %v851_v53, %v540_v0  ;;  %v599_v6 = vmul.f32 %v1412_v10, %v598_v15  ;;  %866 = vrcp.f32 %v1424_v41  ;;  %vm731_vm10 = vcmask 523712  }
  0xd0   :  { %v1439_v33 = vpop.eup %860  ;;  %v549_v34 = vsel %vm1427_vm8, %v548_v20, %v544_v30  ;;  %vm616_vm11 = vweird.f32 %v1345_v44  ;;  %v584_v5 = vmul.f32 %v859_v61, %v583_v46  ;;  %vm587_vm12 = vweird.f32 %v859_v61 }
  0xd1   :  { %v592_v7 = vand.u32 2147483648, %v1359_v48  ;;  %v620_v37 = vand.u32 2147483647, %v1345_v44  ;;  %vm601_vm13 = vweird.f32 %v1347_v23  ;;  %vm586_vm14 = vweird.f32 %v1359_v48 }
  0xd2   :  { %v590_v40 = vand.u32 2147483647, %v1359_v48  ;;  %v1449_v45 = vpop.eup %862  ;;  %v1451_v13 = vor.u32 1.1754944e-38, %v622_v26  ;;  %v600_v47 = vadd.f32 %v1412_v10, %v599_v6  ;;  %vm602_vm15 = vweird.f32 %v1412_v10  ;;  %vm1462_vm2 = vmor %vm586_vm14, %vm587_vm12 }
  0xd3   :  { %v585_v29 = vadd.f32 %v859_v61, %v584_v5  ;;  %vm735_vm0 = vcmask 589312   ;;  %v726_v49 = vperm.slane %v549_v34, %v1387_v56  ;;  %v614_v39 = vmul.f32 %v1407_v36, %v613_v32  ;;  %vm1477_vm5 = vmor %vm601_vm13, %vm602_vm15 }
  0xd4   :  { %vm1457_vm1 = vcmp.eq.f32.partialorder %v605_v27, 8.507059e+37  ;;  %v657_v50 = vmul.f32 %v1439_v33, %v1403_v63  ;;  %vm739_vm3 = vcmask 654912   ;;  %v865_v14 = vpop.eup %864  ;;  %v608_v51 = vor.u32 1.1754944e-38, %v607_v28 }
  0xd5   :  { %v589_v16 = vsel %vm1462_vm2, %v859_v61, %v585_v29  ;;  %v593_v24 = vor.u32 1.1754944e-38, %v592_v7  ;;  %v642_v1 = vmul.f32 %v1449_v45, %v1405_v2  ;;  %v867_v52 = vpop.eup %866  ;;  %vm617_vm4 = vweird.f32 %v1407_v36 }
  0xd6   :  { %vm591_vm7 = vcmp.eq.f32.partialorder %v590_v40, 8.507059e+37  ;;  %vm646_vm8 = vweird.f32 %v1405_v2  ;;  %v652_v54 = vand.u32 2147483648, %v1405_v2  ;;  %vm1483_vm9 = vcmp.eq.f32.partialorder %v620_v37, 8.507059e+37  ;;  %vm1514_vm15 = vmor %vm616_vm11, %vm617_vm4 }
  0xd7   :  { %v604_v8 = vsel %vm1477_vm5, %v1412_v10, %v600_v47  ;;  %v594_v59 = vsel %vm591_vm7, %v593_v24, %v589_v16  ;;  %v643_v60 = vsub.f32 1.0, %v642_v1  ;;  %v627_v23 = vmul.f32 %v867_v52, %v1424_v41 }
  0xd8   :  { %vm743_vm12 = vcmask 720512   ;;  %v728_v38 = vsel %vm727_vm6, %v726_v49, %v1417_v12  ;;  %v615_v25 = vadd.f32 %v1407_v36, %v614_v39  ;;  %v658_v58 = vsub.f32 1.0, %v657_v50 }
  0xd9   :  { %vm661_vm13 = vweird.f32 %v1403_v63  ;;  %v1495_v3 = vadd.f32 1.0, %v865_v14  ;;  %v644_v61 = vmul.f32 %v1449_v45, %v643_v60  ;;  %v628_v35 = vsub.f32 1.0, %v627_v23 }
  0xda   :  { %v635_v10 = vand.u32 2147483647, %v1424_v41  ;;  %v637_v19 = vand.u32 2147483648, %v1424_v41  ;;  %v609_v4 = vsel %vm1457_vm1, %v608_v51, %v604_v8  ;;  %v738_v22 = vperm.slane %v594_v59, %v1401_v62 }
  0xdb   :  { %vm647_vm6 = vweird.f32 %v1449_v45  ;;  %868 = vrcp.f32 %v1495_v3  ;;  %v645_v12 = vadd.f32 %v1449_v45, %v644_v61  ;;  %v629_v17 = vmul.f32 %v867_v52, %v628_v35 }
  0xdc   :  { %vm632_vm14 = vweird.f32 %v867_v52  ;;  %v732_v0 = vsel %vm731_vm10, %v730_v11, %v728_v38  ;;  %v659_v62 = vmul.f32 %v1439_v33, %v658_v58  ;;  %v667_v26 = vand.u32 2147483648, %v1403_v63  ;;  %vm1528_vm10 = vmor %vm646_vm8, %vm647_vm6 }
  0xdd   :  { %v650_v15 = vand.u32 2147483647, %v1405_v2  ;;  %vm631_vm1 = vweird.f32 %v1424_v41  ;;  %v619_v18 = vsel %vm1514_vm15, %v1407_v36, %v615_v25  ;;  %v742_v57 = vperm.slane %v609_v4, %v1397_v43 }
  0xde   :  { %v653_v11 = vor.u32 1.1754944e-38, %v652_v54  ;;  %v630_v27 = vadd.f32 %v867_v52, %v629_v17  ;;  %vm633_vm11 = vmor %vm631_vm1, %vm632_vm14  ;;  %vm636_vm2 = vcmp.eq.f32.partialorder %v635_v10, 8.507059e+37  ;;  %v638_v28 = vor.u32 1.1754944e-38, %v637_v19 }
  0xdf   :  { %v736_v41 = vsel %vm735_vm0, %v734_v31, %v732_v0  ;;  %v745_v36 = vadd.s32 4294967208, %v1119_v21  ;;  %v649_v43 = vsel %vm1528_vm10, %v1449_v45, %v645_v12  ;;  %v749_v30 = vadd.s32 4294967200, %v1119_v21 }
  0xe0   :  { %v634_v46 = vsel %vm633_vm11, %v867_v52, %v630_v27  ;;  %v740_v2 = vsel %vm739_vm3, %v738_v22, %v736_v41  ;;  %v624_v6 = vsel %vm1483_vm9, %v1451_v13, %v619_v18  ;;  %v660_v9 = vadd.f32 %v1439_v33, %v659_v62 }
  0xe1   :  { %v869_v32 = vpop.eup %868  ;;  %v639_v34 = vsel %vm636_vm2, %v638_v28, %v634_v46  ;;  %vm662_vm0 = vweird.f32 %v1439_v33  ;;  %vm651_vm4 = vcmp.eq.f32.partialorder %v650_v15, 8.507059e+37  ;;  %v665_v31 = vand.u32 2147483647, %v1403_v63 }
  0xe2   :  { %v672_v55 = vmul.f32 %v869_v32, %v1495_v3  ;;  %v753_v5 = vadd.s32 4294967192, %v1119_v21  ;;  %v654_v7 = vsel %vm651_vm4, %v653_v11, %v649_v43  ;;  %v744_v37 = vsel %vm743_vm12, %v742_v57, %v740_v2  ;;  %vm1553_vm5 = vmor %vm661_vm13, %vm662_vm0 }
  0xe3   :  { %vm747_vm3 = vcmask 786112   ;;  %v750_v40 = vperm.slane %v639_v34, %v749_v30  ;;  %v746_v47 = vperm.slane %v624_v6, %v745_v36  ;;  %vm751_vm7 = vcmask 851712  }
  0xe4   :  { %v673_v45 = vsub.f32 1.0, %v672_v55  ;;  %v668_v29 = vor.u32 1.1754944e-38, %v667_v26  ;;  %v664_v49 = vsel %vm1553_vm5, %v1439_v33, %v660_v9  ;;  %v680_v39 = vand.u32 2147483647, %v1495_v3 }
  0xe5   :  { %v682_v42 = vand.u32 2147483648, %v1495_v3  ;;  %vm677_vm8 = vweird.f32 %v869_v32  ;;  %v748_v50 = vsel %vm747_vm3, %v746_v47, %v744_v37  ;;  %v754_v14 = vperm.slane %v654_v7, %v753_v5 }
  0xe6   :  { %v674_v48 = vmul.f32 %v869_v32, %v673_v45  ;;  %vm666_vm9 = vcmp.eq.f32.partialorder %v665_v31, 8.507059e+37  ;;  %v752_v63 = vsel %vm751_vm7, %v750_v40, %v748_v50  ;;  %vm755_vm12 = vcmask 917312  }
  0xe7   :  { %v757_v51 = vadd.s32 4294967184, %v1119_v21  ;;  %v669_v16 = vsel %vm666_vm9, %v668_v29, %v664_v49  ;;  %vm676_vm13 = vweird.f32 %v1495_v3  ;;  %v761_v1 = vadd.s32 4294967176, %v1119_v21 }
  0xe8   :  { %v675_v24 = vadd.f32 %v869_v32, %v674_v48  ;;  %vm678_vm6 = vmor %vm676_vm13, %vm677_vm8  ;;  %v683_v33 = vor.u32 1.1754944e-38, %v682_v42  ;;  %vm681_vm14 = vcmp.eq.f32.partialorder %v680_v39, 8.507059e+37  ;;  %v756_v53 = vsel %vm755_vm12, %v754_v14, %v752_v63 }
  0xe9   :  { %vm759_vm15 = vcmask 982912   ;;  %v758_v56 = vperm.slane %v669_v16, %v757_v51  ;;  %vm763_vm1 = vcmask 1048512  }
  0xea   :  { %v679_v52 = vsel %vm678_vm6, %v869_v32, %v675_v24 }
  0xeb   :  { %v684_v54 = vsel %vm681_vm14, %v683_v33, %v679_v52  ;;  %v760_v59 = vsel %vm759_vm15, %v758_v56, %v756_v53 }
  0xec   :  { %v762_v8 = vperm.slane %v684_v54, %v761_v1 }
  0xee   :  { %v764_v21 = vsel %vm763_vm1, %v762_v8, %v760_v59 }
  0xef   :  { %766 = vst [vmem:[#allocation8] sm:$0x1] %v764_v21 }
  0xf0   :  { %777 = dma.vmem_to_hbm [thread:$0]  %s773_s24, 16, %s775_s27, [#allocation5]  }
  0xf1   :  { %946 = dma.done.wait [#allocation5], 16  }
  0xf2   :  { %947 = vsyncadd [#allocation5], 4294967280 }
  0xf3   :  { %782 = vsyncpa [#allocation4], 1 }
  0xf4   :  { %783 = vsyncpa [#allocation7], 1 }
  0xf5   :  { %784 = vsyncpa [#allocation5], 1 }

</bundles_post_ra>
